<compile_context>
chip_gen: v7x
topology: tpu7x:2x2x1
jax: 0.10.0
libtpu: 0.0.40
codegen_flags: <defaults>
</compile_context>

<pallas_src>
import functools

import jax
import jax.numpy as jnp
import numpy as np
from jax import lax
from jax.experimental import pallas as pl
from jax.experimental.pallas import tpu as pltpu


def _fused_embed_kernel(idx_ref,    # VMEM (row_tile, F) int32, field-offset indices (-1 = skip)
                        table_ref,  # VMEM (V, D) float32, concatenated embedding tables
                        out_ref):   # VMEM (row_tile, D) float32
    R, F = idx_ref.shape
    V = table_ref.shape[0]

    idx = idx_ref[...]                                        # (R, F) int32
    iota_v = lax.broadcasted_iota(jnp.int32, (R, V), 1)       # single iota for all fields

    # Field column ranges are disjoint, so OR-ing the per-field equality masks
    # gives the multi-hot row selecting exactly the 8 (or 9) embedding rows.
    onehot = (idx[:, 0:1] == iota_v)
    for f in range(1, F):
        onehot = jnp.logical_or(onehot, idx[:, f:f + 1] == iota_v)

    # One MXU matmul: (R, V) @ (V, D).  -1 sentinel rows contribute nothing.
    out_ref[...] = jnp.dot(onehot.astype(jnp.float32), table_ref[...],
                           preferred_element_type=jnp.float32)


def bbox_embedding(boxes, input_box_counts, past_key_values_length, params):
    B, S, _ = boxes.shape
    max_w, D = params["x1"].shape
    max_h = params["y1"].shape[0]
    max_pos = params["pos"].shape[0]

    # --- concatenated table + per-field column offsets -----------------------
    field_tables = [params["x1"], params["y1"], params["x2"], params["y2"],
                    params["w"], params["h"], params["cx"], params["cy"],
                    params["pos"]]
    sizes = np.array([max_w, max_h, max_w, max_h, max_w, max_h, max_w, max_h,
                      max_pos], dtype=np.int64)
    offsets = np.concatenate([[0], np.cumsum(sizes[:-1])]).astype(np.int32)
    V = int(sizes.sum())
    table = jnp.concatenate([t.astype(jnp.float32) for t in field_tables], axis=0)

    # --- index computation (cheap int arithmetic, done in the wrapper) -------
    boxes = boxes.astype(jnp.int32)
    x1, y1, x2, y2 = boxes[..., 0], boxes[..., 1], boxes[..., 2], boxes[..., 3]
    w = x2 - x1
    h = y2 - y1
    cx = (x1 + x2) // 2            # == ((x1+x2)/2).long() for non-negative coords
    cy = (y1 + y2) // 2
    coord_idx = jnp.stack([x1, y1, x2, y2, w, h, cx, cy], axis=-1)   # (B, S, 8)
    coord_idx = coord_idx + jnp.asarray(offsets[:8], jnp.int32)

    # Positional embedding folded into the same one-hot: valid rows get
    # (s - box_start + pos_offset); invalid rows get -1 (zero contribution).
    if past_key_values_length == 0:
        counts = input_box_counts.astype(jnp.int32)
        s_iota = jnp.arange(S, dtype=jnp.int32)[None, :]             # (1, S)
        box_start = counts[:, 0:1]                                   # (B, 1)
        box_end = counts[:, 1:2] - 1                                 # (B, 1)
        valid = (s_iota >= box_start) & (s_iota < box_end)           # (B, S)
        pos_idx = jnp.where(valid, s_iota - box_start + int(offsets[8]), -1)
    else:
        pos_idx = jnp.full((B, S), -1, jnp.int32)
    idx = jnp.concatenate([coord_idx, pos_idx[..., None].astype(jnp.int32)],
                          axis=-1)                                   # (B, S, 9)
    F = idx.shape[-1]

    # --- fold batch into rows, pad to a row tile ------------------------------
    R = B * S
    idx = idx.reshape(R, F)
    if R > 256:
        row_tile = 256
    else:
        row_tile = max(8, ((R + 7) // 8) * 8)
    R_pad = ((R + row_tile - 1) // row_tile) * row_tile
    if R_pad != R:
        idx = jnp.concatenate(
            [idx, jnp.full((R_pad - R, F), -1, jnp.int32)], axis=0)

    grid = (R_pad // row_tile,)
    sem = "parallel" if grid[0] > 1 else "arbitrary"

    grid_spec = pltpu.PrefetchScalarGridSpec(
        num_scalar_prefetch=0,
        grid=grid,
        in_specs=[
            pl.BlockSpec((row_tile, F), lambda i: (i, 0)),   # indices (row-tiled)
            pl.BlockSpec((V, D), lambda i: (0, 0)),          # fused table (resident)
        ],
        out_specs=pl.BlockSpec((row_tile, D), lambda i: (i, 0)),
    )

    out = pl.pallas_call(
        _fused_embed_kernel,
        out_shape=jax.ShapeDtypeStruct((R_pad, D), jnp.float32),
        grid_spec=grid_spec,
        compiler_params=pltpu.CompilerParams(
            dimension_semantics=(sem,),
            vmem_limit_bytes=48 * 1024 * 1024,
        ),
    )(idx, table)

    return out[:R].reshape(B, S, D)


def bbox_embedding_reference(boxes, input_box_counts, past_key_values_length, params):
    """Pure numpy reference mirroring the PyTorch forward."""
    boxes = np.asarray(boxes)
    counts = np.asarray(input_box_counts)
    x1, y1, x2, y2 = boxes[..., 0], boxes[..., 1], boxes[..., 2], boxes[..., 3]
    w = x2 - x1
    h = y2 - y1
    cx = (x1 + x2) // 2
    cy = (y1 + y2) // 2
    p = {k: np.asarray(v) for k, v in params.items()}
    emb = (p["x1"][x1] + p["y1"][y1] + p["x2"][x2] + p["y2"][y2]
           + p["w"][w] + p["h"][h] + p["cx"][cx] + p["cy"][cy])
    if past_key_values_length == 0:
        for j in range(emb.shape[0]):
            box_start = counts[j, 0]
            box_end = counts[j, 1] - 1
            box_count = box_end - box_start
            emb[j, box_start:box_end] = emb[j, box_start:box_end] + p["pos"][:box_count]
    return emb


if __name__ == "__main__":
    # Small config consistent with the module's __init__.
    MAX_WIDTH = 64     # config.max_width
    MAX_HEIGHT = 48    # config.max_height
    D_MODEL = 32       # config.d_model
    MAX_POS = 16       # config.max_position_embeddings
    B, S = 2, 8

    key = jax.random.PRNGKey(0)
    keys = jax.random.split(key, 12)

    params = {
        "x1": jax.random.normal(keys[0], (MAX_WIDTH, D_MODEL), jnp.float32),
        "y1": jax.random.normal(keys[1], (MAX_HEIGHT, D_MODEL), jnp.float32),
        "x2": jax.random.normal(keys[2], (MAX_WIDTH, D_MODEL), jnp.float32),
        "y2": jax.random.normal(keys[3], (MAX_HEIGHT, D_MODEL), jnp.float32),
        "w":  jax.random.normal(keys[4], (MAX_WIDTH, D_MODEL), jnp.float32),
        "h":  jax.random.normal(keys[5], (MAX_HEIGHT, D_MODEL), jnp.float32),
        "cx": jax.random.normal(keys[6], (MAX_WIDTH, D_MODEL), jnp.float32),
        "cy": jax.random.normal(keys[7], (MAX_HEIGHT, D_MODEL), jnp.float32),
        "pos": jax.random.normal(keys[8], (MAX_POS, D_MODEL), jnp.float32),
    }

    # boxes with x2 >= x1, y2 >= y1, all inside [0, max_width/height)
    x1 = jax.random.randint(keys[9], (B, S), 0, MAX_WIDTH // 2)
    dx = jax.random.randint(keys[10], (B, S), 0, MAX_WIDTH // 2)
    y1 = jax.random.randint(keys[11], (B, S), 0, MAX_HEIGHT // 2)
    dy = jax.random.randint(keys[9], (B, S), 0, MAX_HEIGHT // 2)
    boxes = jnp.stack([x1, y1, x1 + dx, y1 + dy], axis=-1).astype(jnp.int32)

    input_box_counts = jnp.array([[0, 5], [2, 8]], dtype=jnp.int32)  # (B, 2)
    past_key_values_length = 0

    out = bbox_embedding(boxes, input_box_counts, past_key_values_length, params)
    out = jax.block_until_ready(out)

    ref = bbox_embedding_reference(boxes, input_box_counts,
                                   past_key_values_length, params)
    np.testing.assert_allclose(np.asarray(out), ref, rtol=1e-5, atol=1e-5)

    print("KERNEL_OK")
</pallas_src>

<mosaic_0001>
module attributes {stable_mosaic.version = 11 : i64} {
  func.func @_fused_embed_kernel(%arg0: i32, %arg1: memref<16x9xi32, #tpu.memory_space<vmem>>, %arg2: memref<464x32xf32, #tpu.memory_space<vmem>>, %arg3: memref<16x32xf32, #tpu.memory_space<vmem>>) attributes {dimension_semantics = [#tpu.dimension_semantics<arbitrary>], iteration_bounds = array<i64: 1>, scalar_prefetch = 0 : i64, scratch_operands = 0 : i64, tpu.core_type = #tpu.core_type<tc>, window_params = [{transform_indices = @transform_0, window_bounds = array<i64: 16, 9>}, {pipeline_mode = #tpu.pipeline_mode<synchronous>, transform_indices = @transform_1, window_bounds = array<i64: 464, 32>}, {transform_indices = @transform_2, window_bounds = array<i64: 16, 32>}]} {
    %c0 = arith.constant 0 : index
    %c0_0 = arith.constant 0 : index
    %0 = vector.load %arg1[%c0, %c0_0] : memref<16x9xi32, #tpu.memory_space<vmem>>, vector<16x9xi32>
    %1 = tpu.iota {dimensions = array<i32: 1>} : vector<16x464xi32>
    %2 = vector.extract_strided_slice %0 {offsets = [0, 0], sizes = [16, 1], strides = [1, 1]} : vector<16x9xi32> to vector<16x1xi32>
    %3 = vector.broadcast %2 : vector<16x1xi32> to vector<16x464xi32>
    %4 = arith.cmpi eq, %3, %1 : vector<16x464xi32>
    %5 = vector.extract_strided_slice %0 {offsets = [0, 1], sizes = [16, 1], strides = [1, 1]} : vector<16x9xi32> to vector<16x1xi32>
    %6 = vector.broadcast %5 : vector<16x1xi32> to vector<16x464xi32>
    %7 = arith.cmpi eq, %6, %1 : vector<16x464xi32>
    %8 = arith.ori %4, %7 : vector<16x464xi1>
    %9 = vector.extract_strided_slice %0 {offsets = [0, 2], sizes = [16, 1], strides = [1, 1]} : vector<16x9xi32> to vector<16x1xi32>
    %10 = vector.broadcast %9 : vector<16x1xi32> to vector<16x464xi32>
    %11 = arith.cmpi eq, %10, %1 : vector<16x464xi32>
    %12 = arith.ori %8, %11 : vector<16x464xi1>
    %13 = vector.extract_strided_slice %0 {offsets = [0, 3], sizes = [16, 1], strides = [1, 1]} : vector<16x9xi32> to vector<16x1xi32>
    %14 = vector.broadcast %13 : vector<16x1xi32> to vector<16x464xi32>
    %15 = arith.cmpi eq, %14, %1 : vector<16x464xi32>
    %16 = arith.ori %12, %15 : vector<16x464xi1>
    %17 = vector.extract_strided_slice %0 {offsets = [0, 4], sizes = [16, 1], strides = [1, 1]} : vector<16x9xi32> to vector<16x1xi32>
    %18 = vector.broadcast %17 : vector<16x1xi32> to vector<16x464xi32>
    %19 = arith.cmpi eq, %18, %1 : vector<16x464xi32>
    %20 = arith.ori %16, %19 : vector<16x464xi1>
    %21 = vector.extract_strided_slice %0 {offsets = [0, 5], sizes = [16, 1], strides = [1, 1]} : vector<16x9xi32> to vector<16x1xi32>
    %22 = vector.broadcast %21 : vector<16x1xi32> to vector<16x464xi32>
    %23 = arith.cmpi eq, %22, %1 : vector<16x464xi32>
    %24 = arith.ori %20, %23 : vector<16x464xi1>
    %25 = vector.extract_strided_slice %0 {offsets = [0, 6], sizes = [16, 1], strides = [1, 1]} : vector<16x9xi32> to vector<16x1xi32>
    %26 = vector.broadcast %25 : vector<16x1xi32> to vector<16x464xi32>
    %27 = arith.cmpi eq, %26, %1 : vector<16x464xi32>
    %28 = arith.ori %24, %27 : vector<16x464xi1>
    %29 = vector.extract_strided_slice %0 {offsets = [0, 7], sizes = [16, 1], strides = [1, 1]} : vector<16x9xi32> to vector<16x1xi32>
    %30 = vector.broadcast %29 : vector<16x1xi32> to vector<16x464xi32>
    %31 = arith.cmpi eq, %30, %1 : vector<16x464xi32>
    %32 = arith.ori %28, %31 : vector<16x464xi1>
    %33 = vector.extract_strided_slice %0 {offsets = [0, 8], sizes = [16, 1], strides = [1, 1]} : vector<16x9xi32> to vector<16x1xi32>
    %34 = vector.broadcast %33 : vector<16x1xi32> to vector<16x464xi32>
    %35 = arith.cmpi eq, %34, %1 : vector<16x464xi32>
    %36 = arith.ori %32, %35 : vector<16x464xi1>
    %37 = arith.extui %36 : vector<16x464xi1> to vector<16x464xi32>
    %38 = arith.sitofp %37 : vector<16x464xi32> to vector<16x464xf32>
    %c0_1 = arith.constant 0 : index
    %c0_2 = arith.constant 0 : index
    %39 = vector.load %arg2[%c0_1, %c0_2] : memref<464x32xf32, #tpu.memory_space<vmem>>, vector<464x32xf32>
    %cst = arith.constant dense<0.000000e+00> : vector<16x32xf32>
    %40 = tpu.matmul %38, %39, %cst {dimension_numbers = #tpu.dot_dimension_numbers<[1], [0], [0], [1], [0, 0, 1, 1], [], []>} : vector<16x464xf32>, vector<464x32xf32>, vector<16x32xf32> -> vector<16x32xf32>
    %c0_3 = arith.constant 0 : index
    %c0_4 = arith.constant 0 : index
    %41 = vector.load %arg3[%c0_3, %c0_4] : memref<16x32xf32, #tpu.memory_space<vmem>>, vector<16x32xf32>
    tpu.vector_store %arg3[%c0_3, %c0_4], %40 {strides = array<i32>} : memref<16x32xf32, #tpu.memory_space<vmem>>, vector<16x32xf32>,
    return
  }
  func.func @transform_0(%arg0: i32) -> (i32, i32) {
    %c0_i32 = arith.constant 0 : i32
    %c0_i32_0 = arith.constant 0 : i32
    return %arg0, %c0_i32 : i32, i32
  }
  func.func @transform_1(%arg0: i32) -> (i32, i32) {
    %c0_i32 = arith.constant 0 : i32
    %c0_i32_0 = arith.constant 0 : i32
    %c0_i32_1 = arith.constant 0 : i32
    return %c0_i32, %c0_i32_0 : i32, i32
  }
  func.func @transform_2(%arg0: i32) -> (i32, i32) {
    %c0_i32 = arith.constant 0 : i32
    %c0_i32_0 = arith.constant 0 : i32
    return %arg0, %c0_i32 : i32, i32
  }
}

</mosaic_0001>

<bundles_post_ra>
// kernel: tpu_custom_call.1
= control target key start
LH: loop header
LB: loop body
LE: loop exit
PB: predicated region body
PF: predicated region fallthrough
CT: control target
= control target key end

     0   :  { %v633_v1 = vmov 2   ;;  %v634_v2 = vmov 1   ;;  %v635_v8 = vmov 0.0|0.0   ;;  %s1182_s0 = inlined_call_operand.vmem [shape: s32[16,9], index: 0, kind: input, shape index: {}]   ;;  %s1183_s1 = inlined_call_operand.vmem [shape: f32[464,32], index: 1, kind: input, shape index: {}]   ;;  %s1184_s2 = inlined_call_operand.hbm [shape: f32[16,32], index: 2, kind: output, shape index: {}]  }
   0x1   :  { %v665_v0 = vld [vmem:[%s1182_s0] sm:$0xff]  ;;  %594 = vset.pattern.permute.xlu1 %v633_v1  ;;  %592 = vset.pattern.permute.xlu0 %v634_v2  ;;  %v258_v4 = vld [vmem:[%s1183_s1 + $0x108] sm:$0xff]  ;;  %v259_v6 = vld [vmem:[%s1183_s1 + $0x110] sm:$0xff] }
   0x2   :  { %v257_v3 = vld [vmem:[%s1183_s1 + $0x100] sm:$0xff]  ;;  %56 = vperm.xlu1 %594, %v665_v0   ;;  %34 = vperm.xlu0 %592, %v665_v0   ;;  %v260_v7 = vld [vmem:[%s1183_s1 + $0x118] sm:$0xff] }
   0x3   :  { %v540_v5 = vpack.c.bf16 %v258_v4, %v257_v3  ;;  %539 = vmatprep.subr.bf16.mxu1 %v635_v8 }
   0x4   :  { %7 = vsyncpa [#allocation3], 0  ;;  %v543_v9 = vpack.c.bf16 %v260_v7, %v259_v6  ;;  %v261_v10 = vld [vmem:[%s1183_s1 + $0x120] sm:$0xff]  ;;  %v262_v11 = vld [vmem:[%s1183_s1 + $0x128] sm:$0xff]  ;;  %v636_v12 = vmov 3   ;;  %v637_v13 = vmov 0  }
   0x5   :  { %541 = vmatpush1.bf16.msra.mxu1 %v540_v5  ;;  %v695_v14 = vld [vmem:[%s1182_s0 + $0x8] sm:$0xff]  ;;  %v546_v15 = vpack.c.bf16 %v262_v11, %v261_v10  ;;  %v263_v16 = vld [vmem:[%s1183_s1 + $0x130] sm:$0xff]  ;;  %v264_v17 = vld [vmem:[%s1183_s1 + $0x138] sm:$0xff]  ;;  %v638_v18 = vmov 4   ;;  %v639_v29 = vmov 7   ;;  %v640_v32 = vmov 5  }
   0x6   :  { %542 = vmatprep.subr.bf16.mxu1 %v635_v8  ;;  %595 = vset.pattern.permute.xlu1 %v636_v12  ;;  %v549_v19 = vpack.c.bf16 %v264_v17, %v263_v16  ;;  %v241_v20 = vld [vmem:[%s1183_s1 + $0x80] sm:$0xff]  ;;  %v242_v21 = vld [vmem:[%s1183_s1 + $0x88] sm:$0xff]  ;;  %v267_v30 = vld [vmem:[%s1183_s1 + $0x150] sm:$0xff]  ;;  %v641_v45 = vmov 6   ;;  %v642_v60 = vmov 8  }
   0x7   :  { %593 = vset.pattern.permute.xlu0 %v637_v13  ;;  %78 = vperm.xlu1 %595, %v665_v0   ;;  %v225_v22 = vld [vmem:[%s1183_s1] sm:$0xff]  ;;  %v266_v24 = vld [vmem:[%s1183_s1 + $0x148] sm:$0xff]  ;;  %v507_v25 = vpack.c.bf16 %v242_v21, %v241_v20  ;;  %v268_v31 = vld [vmem:[%s1183_s1 + $0x158] sm:$0xff] }
   0x8   :  { %20 = vperm.xlu0 %593, %v665_v0   ;;  %v265_v23 = vld [vmem:[%s1183_s1 + $0x140] sm:$0xff]  ;;  %v226_v26 = vld [vmem:[%s1183_s1 + $0x8] sm:$0xff]  ;;  %v243_v33 = vld [vmem:[%s1183_s1 + $0x90] sm:$0xff]  ;;  %v555_v38 = vpack.c.bf16 %v268_v31, %v267_v30 }
   0x9   :  { %544 = vmatpush1.bf16.msra.mxu1 %v543_v9  ;;  %v509_v27 = vpack.c.bf16 %v226_v26, %v225_v22  ;;  %v552_v28 = vpack.c.bf16 %v266_v24, %v265_v23  ;;  %508 = vmatprep.subr.bf16.mxu0 %v507_v25  ;;  %v244_v34 = vld [vmem:[%s1183_s1 + $0x98] sm:$0xff]  ;;  %v227_v36 = vld [vmem:[%s1183_s1 + $0x10] sm:$0xff]  ;;  %v269_v40 = vld [vmem:[%s1183_s1 + $0x160] sm:$0xff] }
   0xa   :  { %545 = vmatprep.subr.bf16.mxu1 %v635_v8  ;;  %v511_v35 = vpack.c.bf16 %v244_v34, %v243_v33  ;;  %v228_v37 = vld [vmem:[%s1183_s1 + $0x18] sm:$0xff]  ;;  %v270_v41 = vld [vmem:[%s1183_s1 + $0x168] sm:$0xff]  ;;  %v245_v42 = vld [vmem:[%s1183_s1 + $0xa0] sm:$0xff] }
   0xb   :  { %596 = vset.pattern.permute.xlu1 %v638_v18  ;;  %510 = vmatpush3.bf16.msra.mxu0 %v509_v27  ;;  %v513_v39 = vpack.c.bf16 %v228_v37, %v227_v36  ;;  %v246_v43 = vld [vmem:[%s1183_s1 + $0xa8] sm:$0xff]  ;;  %v229_v44 = vld [vmem:[%s1183_s1 + $0x20] sm:$0xff]  ;;  %v247_v49 = vld [vmem:[%s1183_s1 + $0xb0] sm:$0xff]  ;;  %v558_v52 = vpack.c.bf16 %v270_v41, %v269_v40  ;;  %v14_v40 = vlaneseq }
   0xc   :  { %23 = vperm.xlu0 %593, %v695_v14   ;;  %100 = vperm.xlu1 %596, %v665_v0   ;;  %v515_v46 = vpack.c.bf16 %v246_v43, %v245_v42  ;;  %v230_v47 = vld [vmem:[%s1183_s1 + $0x28] sm:$0xff]  ;;  %v248_v50 = vld [vmem:[%s1183_s1 + $0xb8] sm:$0xff]  ;;  %v231_v51 = vld [vmem:[%s1183_s1 + $0x30] sm:$0xff] }
   0xd   :  { %547 = vmatpush1.bf16.msra.mxu1 %v546_v15  ;;  %512 = vmatprep.subr.bf16.mxu0 %v511_v35  ;;  %v517_v48 = vpack.c.bf16 %v230_v47, %v229_v44  ;;  %v271_v53 = vld [vmem:[%s1183_s1 + $0x170] sm:$0xff]  ;;  %v519_v54 = vpack.c.bf16 %v248_v50, %v247_v49  ;;  %v232_v55 = vld [vmem:[%s1183_s1 + $0x38] sm:$0xff]  ;;  %v249_v58 = vld [vmem:[%s1183_s1 + $0xc0] sm:$0xff]  ;;  %v889_v42 = vand.u32 127, %v14_v40 }
   0xe   :  { %548 = vmatprep.subr.bf16.mxu1 %v635_v8  ;;  %v272_v56 = vld [vmem:[%s1183_s1 + $0x178] sm:$0xff]  ;;  %v521_v57 = vpack.c.bf16 %v232_v55, %v231_v51  ;;  %v250_v59 = vld [vmem:[%s1183_s1 + $0xc8] sm:$0xff]  ;;  %v233_v62 = vld [vmem:[%s1183_s1 + $0x40] sm:$0xff]  ;;  %v1194_v55 = vmov 0 }
   0xf   :  { %514 = vmatpush3.bf16.msra.mxu0 %v513_v39  ;;  %v523_v61 = vpack.c.bf16 %v250_v59, %v249_v58  ;;  %v234_v63 = vld [vmem:[%s1183_s1 + $0x48] sm:$0xff]  ;;  %v251_v6 = vld [vmem:[%s1183_s1 + $0xd0] sm:$0xff]  ;;  %v252_v7 = vld [vmem:[%s1183_s1 + $0xd8] sm:$0xff]  ;;  %v1198_v58 = vmov 0  ;;  %v1200_v59 = vmov 0 }
  0x10   :  { %599 = vset.pattern.permute.xlu0 %v633_v1  ;;  %597 = vset.pattern.permute.xlu1 %v634_v2  ;;  %v561_v1 = vpack.c.bf16 %v272_v56, %v271_v53  ;;  %v273_v2 = vld [vmem:[%s1183_s1 + $0x180] sm:$0xff]  ;;  %v274_v3 = vld [vmem:[%s1183_s1 + $0x188] sm:$0xff]  ;;  %v525_v4 = vpack.c.bf16 %v234_v63, %v233_v62  ;;  %v235_v9 = vld [vmem:[%s1183_s1 + $0x50] sm:$0xff]  ;;  %v1204_v62 = vmov 0 }
  0x11   :  { %59 = vperm.xlu0 %599, %v695_v14   ;;  %37 = vperm.xlu1 %597, %v695_v14   ;;  %v564_v5 = vpack.c.bf16 %v274_v3, %v273_v2  ;;  %v275_v10 = vld [vmem:[%s1183_s1 + $0x190] sm:$0xff]  ;;  %v276_v11 = vld [vmem:[%s1183_s1 + $0x198] sm:$0xff]  ;;  %v253_v16 = vld [vmem:[%s1183_s1 + $0xe0] sm:$0xff] }
  0x12   :  { %550 = vmatpush1.bf16.msra.mxu1 %v549_v19  ;;  %516 = vmatprep.subr.bf16.mxu0 %v515_v46  ;;  %v236_v13 = vld [vmem:[%s1183_s1 + $0x58] sm:$0xff]  ;;  %v254_v17 = vld [vmem:[%s1183_s1 + $0xe8] sm:$0xff]  ;;  %v237_v19 = vld [vmem:[%s1183_s1 + $0x60] sm:$0xff]  ;;  %v567_v21 = vpack.c.bf16 %v276_v11, %v275_v10  ;;  %v906_v46 = vadd.s32 256, %v889_v42 }
  0x13   :  { %551 = vmatprep.subr.bf16.mxu1 %v635_v8  ;;  %518 = vmatpush3.bf16.msra.mxu0 %v517_v48  ;;  %v529_v15 = vpack.c.bf16 %v236_v13, %v235_v9  ;;  %v238_v20 = vld [vmem:[%s1183_s1 + $0x68] sm:$0xff]  ;;  %v277_v22 = vld [vmem:[%s1183_s1 + $0x1a0] sm:$0xff]  ;;  %v255_v24 = vld [vmem:[%s1183_s1 + $0xf0] sm:$0xff] }
  0x14   :  { %520 = vmatprep.subr.bf16.mxu0 %v519_v54  ;;  %v278_v23 = vld [vmem:[%s1183_s1 + $0x1a8] sm:$0xff]  ;;  %v256_v25 = vld [vmem:[%s1183_s1 + $0xf8] sm:$0xff]  ;;  %v533_v26 = vpack.c.bf16 %v238_v20, %v237_v19  ;;  %v281_v35 = vld [vmem:[%s1183_s1 + $0x1c0] sm:$0xff] }
  0x15   :  { %602 = vset.pattern.permute.xlu0 %v639_v29  ;;  %598 = vset.pattern.permute.xlu1 %v640_v32  ;;  %v535_v27 = vpack.c.bf16 %v256_v25, %v255_v24  ;;  %v240_v30 = vld [vmem:[%s1183_s1 + $0x78] sm:$0xff]  ;;  %v570_v31 = vpack.c.bf16 %v278_v23, %v277_v22  ;;  %v282_v36 = vld [vmem:[%s1183_s1 + $0x1c8] sm:$0xff] }
  0x16   :  { %166 = vperm.xlu0 %602, %v665_v0   ;;  %122 = vperm.xlu1 %598, %v665_v0   ;;  %v576_v37 = vpack.c.bf16 %v282_v36, %v281_v35 }
  0x17   :  { %553 = vmatpush1.bf16.msra.mxu1 %v552_v28  ;;  %522 = vmatpush3.bf16.msra.mxu0 %v521_v57  ;;  %v239_v28 = vld [vmem:[%s1183_s1 + $0x70] sm:$0xff]  ;;  %v1196_v57 = vmov 0 }
  0x18   :  { %554 = vmatprep.subr.bf16.mxu1 %v635_v8  ;;  %524 = vmatprep.subr.bf16.mxu0 %v523_v61  ;;  %v537_v33 = vpack.c.bf16 %v240_v30, %v239_v28 }
  0x1a   :  { %605 = vset.pattern.permute.xlu0 %v640_v32  ;;  %600 = vset.pattern.permute.xlu1 %v641_v45  ;;  %v280_v32 = vld [vmem:[%s1183_s1 + $0x1b8] sm:$0xff] }
  0x1b   :  { %125 = vperm.xlu0 %605, %v695_v14   ;;  %144 = vperm.xlu1 %600, %v665_v0  }
  0x1c   :  { %556 = vmatpush1.bf16.msra.mxu1 %v555_v38  ;;  %526 = vmatpush3.bf16.msra.mxu0 %v525_v4 }
  0x1d   :  { %557 = vmatprep.subr.bf16.mxu1 %v635_v8 }
  0x1f   :  { %608 = vset.pattern.permute.xlu0 %v642_v60  ;;  %601 = vset.pattern.permute.xlu1 %v636_v12  ;;  %v527_v12 = vpack.c.bf16 %v252_v7, %v251_v6  ;;  %v643_v6 = vmov 0.0  }
  0x20   :  { %191 = vperm.xlu0 %608, %v695_v14   ;;  %81 = vperm.xlu1 %601, %v695_v14  }
  0x21   :  { %559 = vmatpush1.bf16.msra.mxu1 %v558_v52  ;;  %528 = vmatprep.subr.bf16.mxu0 %v527_v12  ;;  %v1223_v12 = vmov 0 }
  0x22   :  { %560 = vmatprep.subr.bf16.mxu1 %v635_v8  ;;  %530 = vmatpush3.bf16.msra.mxu0 %v529_v15 }
  0x24   :  { %603 = vset.pattern.permute.xlu1 %v638_v18  ;;  %v531_v18 = vpack.c.bf16 %v254_v17, %v253_v16 }
  0x25   :  { %562 = vmatpush1.bf16.msra.mxu1 %v561_v1  ;;  %103 = vperm.xlu1 %603, %v695_v14   ;;  %v1209_v1 = vmov 0 }
  0x26   :  { %563 = vmatprep.subr.bf16.mxu1 %v635_v8  ;;  %532 = vmatprep.subr.bf16.mxu0 %v531_v18  ;;  %v1229_v18 = vmov 0 }
  0x27   :  { %534 = vmatpush3.bf16.msra.mxu0 %v533_v26 }
  0x28   :  { %536 = vmatprep.subr.bf16.mxu0 %v535_v27 }
  0x29   :  { %565 = vmatpush1.bf16.msra.mxu1 %v564_v5  ;;  %604 = vset.pattern.permute.xlu1 %v642_v60  ;;  %v1202_v60 = vmov 0  ;;  %v1217_v5 = vmov 0 }
  0x2a   :  { %566 = vmatprep.subr.bf16.mxu1 %v635_v8  ;;  %188 = vperm.xlu1 %604, %v665_v0   ;;  %v279_v0 = vld [vmem:[%s1183_s1 + $0x1b0] sm:$0xff]  ;;  %s644_s1 = smov [#allocation2]  }
  0x2b   :  { %v573_v34 = vpack.c.bf16 %v280_v32, %v279_v0  ;;  %538 = vmatpush3.bf16.msra.mxu0 %v537_v33  ;;  %s448_s13 = sshll.u32 %s644_s1, 4  ;;  %s449_s13 = int_to_ptr.vmem [resolvable:$true] %s448_s13 }
  0x2c   :  { %s609_s14 = scalar_lea.vmem %s449_s13, 256  ;;  %p614_p1 = scmp.lt.s32.totalorder %s449_s13, %s449_s13 }
  0x2d   :  { %568 = vmatpush1.bf16.msra.mxu1 %v567_v21  ;;  %v1233_v21 = vmov 0  ;;  %p610_p0 = scmp.ne.s32.totalorder %s449_s13, %s609_s14  ;;  %p615_p2 = scmp.lt.s32.totalorder %s609_s14, %s609_s14 }
  0x2e   :  { %569 = vmatprep.subr.bf16.mxu1 %v635_v8  ;;  %606 = vset.pattern.permute.xlu1 %v641_v45  ;;  %v903_v45 = vadd.s32 384, %v889_v42 }
  0x2f   :  { %147 = vperm.xlu1 %606, %v695_v14   ;;  %p616_p3 = por %p615_p2, %p614_p1 }
  0x31   :  { %571 = vmatpush1.bf16.msra.mxu1 %v570_v31  ;;  %p617_p4 = pnand %p616_p3, %p610_p0 }
  0x32   :  { %572 = vmatprep.subr.bf16.mxu1 %v635_v8 }
  0x33   :  { %607 = vset.pattern.permute.xlu1 %v639_v29  ;;  %v894_v29 = vadd.s32 128, %v889_v42 }
  0x34   :  { %169 = vperm.xlu1 %607, %v695_v14  }
  0x35   :  { %574 = vmatpush1.bf16.msra.mxu1 %v573_v34 }
  0x36   :  { %575 = vmatprep.subr.bf16.mxu1 %v635_v8 }
  0x39   :  { %577 = vmatpush1.bf16.msra.mxu1 %v576_v37 }
  0x81   :  { %v885_v38 = vpop.permute.xlu1 %56  ;;  %v35_v41 = vpop.permute.xlu0 %34 }
  0x82   :  { %vm40_vm0 = vcmp.eq.s32.totalorder %v35_v41, %v894_v29  ;;  %vm39_vm3 = vcmp.eq.s32.totalorder %v35_v41, %v889_v42  ;;  %vm62_vm5 = vcmp.eq.s32.totalorder %v885_v38, %v894_v29  ;;  %vm42_vm6 = vcmp.eq.s32.totalorder %v35_v41, %v903_v45 }
  0x83   :  { %vm41_vm8 = vcmp.eq.s32.totalorder %v35_v41, %v906_v46 }
  0x86   :  { %v887_v39 = vpop.permute.xlu1 %78 }
  0x87   :  { %v21_v44 = vpop.permute.xlu0 %20  ;;  %vm84_vm13 = vcmp.eq.s32.totalorder %v887_v39, %v894_v29 }
  0x88   :  { %vm26_vm1 = vcmp.eq.s32.totalorder %v21_v44, %v894_v29  ;;  %vm25_vm4 = vcmp.eq.s32.totalorder %v21_v44, %v889_v42  ;;  %vm28_vm7 = vcmp.eq.s32.totalorder %v21_v44, %v903_v45  ;;  %vm27_vm9 = vcmp.eq.s32.totalorder %v21_v44, %v906_v46 }
  0x89   :  { %vm48_vm2 = vmor %vm26_vm1, %vm40_vm0 }
  0x8a   :  { %vm70_vm10 = vmor %vm48_vm2, %vm62_vm5  ;;  %vm61_vm5 = vcmp.eq.s32.totalorder %v885_v38, %v889_v42 }
  0x8b   :  { %v891_v43 = vpop.permute.xlu1 %100  ;;  %v900_v8 = vpop.permute.xlu0 %23  ;;  %vm918_vm11 = vmor %vm25_vm4, %vm39_vm3 }
  0x8c   :  { %vm106_vm12 = vcmp.eq.s32.totalorder %v891_v43, %v894_v29  ;;  %vm928_vm14 = vmor %vm28_vm7, %vm42_vm6  ;;  %vm32_vm15 = vcmp.eq.s32.totalorder %v900_v8, %v903_v45 }
  0x8d   :  { %vm936_vm1 = vmor %vm27_vm9, %vm41_vm8  ;;  %vm64_vm8 = vcmp.eq.s32.totalorder %v885_v38, %v903_v45 }
  0x8e   :  { %vm92_vm2 = vmor %vm70_vm10, %vm84_vm13  ;;  %vm30_vm10 = vcmp.eq.s32.totalorder %v900_v8, %v894_v29 }
  0x8f   :  { %vm114_vm4 = vmor %vm92_vm2, %vm106_vm12  ;;  %vm29_vm2 = vcmp.eq.s32.totalorder %v900_v8, %v889_v42 }
  0x90   :  { %v896_v14 = vpop.permute.xlu1 %37  ;;  %v922_v49 = vpop.permute.xlu0 %59  ;;  %vm958_vm9 = vmor %vm918_vm11, %vm61_vm5 }
  0x91   :  { %vm46_vm0 = vcmp.eq.s32.totalorder %v896_v14, %v903_v45  ;;  %v1195_v55 = vsel %vm958_vm9, 4294967295, %v1194_v55  ;;  %vm44_vm12 = vcmp.eq.s32.totalorder %v896_v14, %v894_v29  ;;  %vm43_vm11 = vcmp.eq.s32.totalorder %v896_v14, %v889_v42 }
  0x92   :  { %vm946_vm6 = vmor %vm32_vm15, %vm46_vm0  ;;  %vm68_vm15 = vcmp.eq.s32.totalorder %v922_v49, %v903_v45 }
  0x93   :  { %vm72_vm0 = vmor %vm928_vm14, %vm64_vm8  ;;  %vm86_vm14 = vcmp.eq.s32.totalorder %v887_v39, %v903_v45 }
  0x94   :  { %vm988_vm8 = vmor %vm946_vm6, %vm68_vm15  ;;  %vm63_vm6 = vcmp.eq.s32.totalorder %v885_v38, %v906_v46 }
  0x95   :  { %v910_v47 = vpop.permute.xlu1 %122  ;;  %v950_v54 = vpop.permute.xlu0 %166  ;;  %v1199_v58 = vsel %vm988_vm8, 4294967295, %v1198_v58 }
  0x96   :  { %vm128_vm3 = vcmp.eq.s32.totalorder %v910_v47, %v894_v29  ;;  %vm172_vm9 = vcmp.eq.s32.totalorder %v950_v54, %v894_v29 }
  0x97   :  { %vm136_vm13 = vmor %vm114_vm4, %vm128_vm3  ;;  %vm108_vm3 = vcmp.eq.s32.totalorder %v891_v43, %v903_v45 }
  0x98   :  { %vm980_vm4 = vmor %vm30_vm10, %vm44_vm12 }
  0x99   :  { %v1197_v57 = vsel %vm980_vm4, 4294967295, %v1196_v57  ;;  %vm94_vm12 = vmor %vm72_vm0, %vm86_vm14 }
  0x9a   :  { %v940_v52 = vpop.permute.xlu1 %144  ;;  %vm116_vm8 = vmor %vm94_vm12, %vm108_vm3  ;;  %vm105_vm12 = vcmp.eq.s32.totalorder %v891_v43, %v889_v42  ;;  %v126_v13 = vpop.permute.xlu0 %125 }
  0x9b   :  { %vm150_vm7 = vcmp.eq.s32.totalorder %v940_v52, %v894_v29  ;;  %vm152_vm4 = vcmp.eq.s32.totalorder %v940_v52, %v903_v45  ;;  %vm1020_vm14 = vmor %vm936_vm1, %vm63_vm6  ;;  %vm1211_vm1 = vnez %v1197_v57 }
  0x9c   :  { %vm158_vm5 = vmor %vm136_vm13, %vm150_vm7  ;;  %vm130_vm7 = vcmp.eq.s32.totalorder %v910_v47, %v903_v45  ;;  %v1205_v62 = vsel %vm1020_vm14, 4294967295, %v1204_v62 }
  0x9d   :  { %vm994_vm13 = vmor %vm29_vm2, %vm43_vm11  ;;  %vm31_vm2 = vcmp.eq.s32.totalorder %v900_v8, %v906_v46  ;;  %vm66_vm11 = vcmp.eq.s32.totalorder %v922_v49, %v894_v29 }
  0x9e   :  { %v1201_v59 = vsel %vm994_vm13, 4294967295, %v1200_v59  ;;  %vm998_vm10 = vmor %vm158_vm5, %vm172_vm9  ;;  %vm45_vm9 = vcmp.eq.s32.totalorder %v896_v14, %v906_v46  ;;  %vm174_vm5 = vcmp.eq.s32.totalorder %v950_v54, %v903_v45  ;;  %vm1206_vm13 = vnez %v1199_v58 }
  0x9f   :  { %v974_v56 = vpop.permute.xlu1 %81  ;;  %v1203_v60 = vsel %vm998_vm10, 4294967295, %v1202_v60  ;;  %vm138_vm0 = vmor %vm116_vm8, %vm130_vm7  ;;  %vm83_vm8 = vcmp.eq.s32.totalorder %v887_v39, %v889_v42  ;;  %v192_v20 = vpop.permute.xlu0 %191 }
  0xa0   :  { %vm90_vm15 = vcmp.eq.s32.totalorder %v974_v56, %v903_v45  ;;  %vm160_vm3 = vmor %vm138_vm0, %vm152_vm4  ;;  %vm127_vm4 = vcmp.eq.s32.totalorder %v910_v47, %v889_v42 }
  0xa1   :  { %vm1028_vm10 = vmor %vm1206_vm13, %vm90_vm15 }
  0xa2   :  { %vm1034_vm7 = vmor %vm31_vm2, %vm45_vm9  ;;  %vm1216_vm2 = vnez %v1195_v55 }
  0xa3   :  { %v1210_v1 = vsel %vm1034_vm7, 4294967295, %v1209_v1  ;;  %vm1040_vm6 = vmor %vm1211_vm1, %vm66_vm11  ;;  %vm65_vm11 = vcmp.eq.s32.totalorder %v922_v49, %v889_v42 }
  0xa4   :  { %v1014_v61 = vpop.permute.xlu1 %103  ;;  %vm1046_vm13 = vmor %vm160_vm3, %vm174_vm5  ;;  %vm149_vm5 = vcmp.eq.s32.totalorder %v940_v52, %v889_v42 }
  0xa5   :  { %vm112_vm15 = vcmp.eq.s32.totalorder %v1014_v61, %v903_v45  ;;  %vm91_vm9 = vmor %vm1216_vm2, %vm83_vm8  ;;  %vm1219_vm8 = vnez %v1203_v60  ;;  %vm1185_vm2 = vcmask 654336  }
  0xa6   :  { %vm113_vm0 = vmor %vm91_vm9, %vm105_vm12  ;;  %vm171_vm9 = vcmp.eq.s32.totalorder %v950_v54, %v889_v42 }
  0xa7   :  { %vm135_vm14 = vmor %vm113_vm0, %vm127_vm4 }
  0xa8   :  { %vm1062_vm3 = vmor %vm1028_vm10, %vm112_vm15  ;;  %vm1220_vm10 = vnez %v1201_v59 }
  0xa9   :  { %v189_v4 = vpop.permute.xlu1 %188  ;;  %v1218_v5 = vsel %vm1062_vm3, 4294967295, %v1217_v5  ;;  %vm1076_vm15 = vmor %vm1220_vm10, %vm65_vm11  ;;  %vm67_vm11 = vcmp.eq.s32.totalorder %v922_v49, %v906_v46  ;;  %vm129_vm10 = vcmp.eq.s32.totalorder %v910_v47, %v906_v46 }
  0xaa   :  { %vm194_vm1 = vcmp.eq.s32.totalorder %v189_v4, %v894_v29  ;;  %vm196_vm7 = vcmp.eq.s32.totalorder %v189_v4, %v903_v45  ;;  %vm193_vm0 = vcmp.eq.s32.totalorder %v189_v4, %v889_v42 }
  0xab   :  { %vm202_vm12 = vmor %vm1219_vm8, %vm194_vm1  ;;  %vm88_vm1 = vcmp.eq.s32.totalorder %v974_v56, %v894_v29 }
  0xac   :  { %v460_v7 = vsel %vm202_vm12, 1.0, %v643_v6  ;;  %vm204_vm4 = vmor %vm1046_vm13, %vm196_vm7  ;;  %vm107_vm12 = vcmp.eq.s32.totalorder %v891_v43, %v906_v46  ;;  %vm85_vm13 = vcmp.eq.s32.totalorder %v887_v39, %v906_v46 }
  0xad   :  { %354 = vmatprep.mubr.f32.mxu0 %v460_v7  ;;  %v462_v10 = vsel %vm204_vm4, 1.0, %v643_v6  ;;  %vm157_vm8 = vmor %vm135_vm14, %vm149_vm5  ;;  %vm1225_vm5 = vnez %v1205_v62  ;;  %vm151_vm4 = vcmp.eq.s32.totalorder %v940_v52, %v906_v46 }
  0xae   :  { %467 = vmatprep.mubr.msk.f32.mxu1 %vm1185_vm2, %v462_v10  ;;  %v1086_v11 = vpop.permute.xlu1 %147  ;;  %vm179_vm7 = vmor %vm157_vm8, %vm171_vm9 }
  0xaf   :  { %vm201_vm3 = vmor %vm179_vm7, %vm193_vm0  ;;  %vm173_vm0 = vcmp.eq.s32.totalorder %v950_v54, %v906_v46  ;;  %vm1226_vm7 = vnez %v1210_v1 }
  0xb0   :  { %vm1096_vm14 = vmor %vm1040_vm6, %vm88_vm1  ;;  %v459_v15 = vsel %vm201_vm3, 1.0, %v643_v6  ;;  %vm195_vm3 = vcmp.eq.s32.totalorder %v189_v4, %v906_v46 }
  0xb1   :  { %v1224_v12 = vsel %vm1096_vm14, 4294967295, %v1223_v12  ;;  %vm93_vm9 = vmor %vm1225_vm5, %vm85_vm13  ;;  %355 = vmatmul.mubr.f32.vlgmr.msra.gmra.mrb[0].mxu0 %v459_v15  ;;  %vm87_vm13 = vcmp.eq.s32.totalorder %v974_v56, %v889_v42  ;;  %vm134_vm5 = vcmp.eq.s32.totalorder %v126_v13, %v903_v45 }
  0xb2   :  { %vm115_vm8 = vmor %vm93_vm9, %vm107_vm12  ;;  %vm156_vm12 = vcmp.eq.s32.totalorder %v1086_v11, %v903_v45 }
  0xb3   :  { %vm1109_vm6 = vmor %vm1226_vm7, %vm67_vm11  ;;  %v170_v17 = vpop.permute.xlu1 %169 }
  0xb4   :  { %vm137_vm1 = vmor %vm115_vm8, %vm129_vm10  ;;  %vm178_vm11 = vcmp.eq.s32.totalorder %v170_v17, %v903_v45  ;;  %vm110_vm10 = vcmp.eq.s32.totalorder %v1014_v61, %v894_v29 }
  0xb5   :  { %vm159_vm2 = vmor %vm137_vm1, %vm151_vm4  ;;  %vm1231_vm4 = vnez %v1218_v5  ;;  %vm132_vm1 = vcmp.eq.s32.totalorder %v126_v13, %v894_v29 }
  0xb6   :  { %vm181_vm9 = vmor %vm159_vm2, %vm173_vm0  ;;  %vm89_vm0 = vcmp.eq.s32.totalorder %v974_v56, %v906_v46 }
  0xb7   :  { %vm203_vm14 = vmor %vm181_vm9, %vm195_vm3  ;;  %vm154_vm3 = vcmp.eq.s32.totalorder %v1086_v11, %v894_v29  ;;  %vm1232_vm9 = vnez %v1224_v12 }
  0xb8   :  { %vm1122_vm7 = vmor %vm1076_vm15, %vm87_vm13  ;;  %v461_v19 = vsel %vm203_vm14, 1.0, %v643_v6  ;;  %vm176_vm13 = vcmp.eq.s32.totalorder %v170_v17, %v894_v29 }
  0xb9   :  { %v1230_v18 = vsel %vm1122_vm7, 4294967295, %v1229_v18  ;;  %vm142_vm8 = vmor %vm1231_vm4, %vm134_vm5  ;;  %430 = vmatmul.mubr.f32.vlgmr.msra.gmra.mrb[0].mxu1 %v461_v19  ;;  %vm198_vm7 = vcmp.eq.s32.totalorder %v192_v20, %v894_v29 }
  0xba   :  { %vm164_vm2 = vmor %vm142_vm8, %vm156_vm12  ;;  %vm200_vm12 = vcmp.eq.s32.totalorder %v192_v20, %v903_v45  ;;  %vm109_vm8 = vcmp.eq.s32.totalorder %v1014_v61, %v889_v42 }
  0xbb   :  { %vm186_vm15 = vmor %vm164_vm2, %vm178_vm11 }
  0xbc   :  { %vm118_vm14 = vmor %vm1232_vm9, %vm110_vm10  ;;  %vm131_vm9 = vcmp.eq.s32.totalorder %v126_v13, %v889_v42 }
  0xbd   :  { %vm140_vm5 = vmor %vm118_vm14, %vm132_vm1  ;;  %vm153_vm14 = vcmp.eq.s32.totalorder %v1086_v11, %v889_v42 }
  0xbe   :  { %vm1142_vm4 = vmor %vm1109_vm6, %vm89_vm0  ;;  %vm175_vm6 = vcmp.eq.s32.totalorder %v170_v17, %v889_v42  ;;  %vm1235_vm0 = vnez %v1230_v18 }
  0xbf   :  { %v1234_v21 = vsel %vm1142_vm4, 4294967295, %v1233_v21  ;;  %vm162_vm11 = vmor %vm140_vm5, %vm154_vm3  ;;  %vm197_vm5 = vcmp.eq.s32.totalorder %v192_v20, %v889_v42  ;;  %vm155_vm4 = vcmp.eq.s32.totalorder %v1086_v11, %v906_v46 }
  0xc0   :  { %vm184_vm2 = vmor %vm162_vm11, %vm176_vm13  ;;  %vm1236_vm13 = vcmask 654336  }
  0xc1   :  { %vm206_vm10 = vmor %vm184_vm2, %vm198_vm7  ;;  %vm111_vm7 = vcmp.eq.s32.totalorder %v1014_v61, %v906_v46 }
  0xc2   :  { %v464_v22 = vsel %vm206_vm10, 1.0, %v643_v6  ;;  %vm208_vm1 = vmor %vm186_vm15, %vm200_vm12  ;;  %vm133_vm12 = vcmp.eq.s32.totalorder %v126_v13, %v906_v46 }
  0xc3   :  { %359 = vmatprep.mubr.f32.mxu0 %v464_v22  ;;  %v466_v23 = vsel %vm208_vm1, 1.0, %v643_v6  ;;  %vm117_vm3 = vmor %vm1235_vm0, %vm109_vm8  ;;  %vm177_vm1 = vcmp.eq.s32.totalorder %v170_v17, %v906_v46  ;;  %vm1237_vm8 = vnez %v1234_v21 }
  0xc4   :  { %468 = vmatprep.mubr.msk.f32.mxu1 %vm1236_vm13, %v466_v23  ;;  %vm139_vm11 = vmor %vm117_vm3, %vm131_vm9  ;;  %vm199_vm9 = vcmp.eq.s32.totalorder %v192_v20, %v906_v46 }
  0xc5   :  { %vm161_vm15 = vmor %vm139_vm11, %vm153_vm14 }
  0xc6   :  { %vm183_vm2 = vmor %vm161_vm15, %vm175_vm6  ;;  %vm440_vm6 = vcmask 261120  }
  0xc7   :  { %vm205_vm10 = vmor %vm183_vm2, %vm197_vm5 }
  0xc8   :  { %v463_v24 = vsel %vm205_vm10, 1.0, %v643_v6  ;;  %vm119_vm0 = vmor %vm1237_vm8, %vm111_vm7 }
  0xc9   :  { %360 = vmatmul.mubr.f32.gmra.mrb[2].mxu0 %v463_v24  ;;  %vm141_vm3 = vmor %vm119_vm0, %vm133_vm12 }
  0xca   :  { %vm163_vm13 = vmor %vm141_vm3, %vm155_vm4 }
  0xcb   :  { %vm185_vm14 = vmor %vm163_vm13, %vm177_vm1 }
  0xcc   :  { %vm207_vm11 = vmor %vm185_vm14, %vm199_vm9 }
  0xcd   :  { %v465_v25 = vsel %vm207_vm11, 1.0, %v643_v6 }
  0xce   :  { %435 = vmatmul.mubr.f32.gmra.mrb[2].mxu1 %v465_v25 }
 0x184   :  { %v501_v26 = vpop.f32.mrb[0].mxu0 }
 0x185   :  { %v502_v27 = vpop.f32.mrb[1].mxu0 }
 0x186   :  { %v503_v28 = vadd.f32 %v502_v27, %v501_v26 }
 0x18c   :  { %v431_v30 = vpop.f32.mrb[0].mxu1 }
 0x18d   :  { %v432_v31 = vadd.f32 %v503_v28, %v431_v30  ;;  %v433_v0 = vpop.f32.mrb[1].mxu1 }
 0x18f   :  { %441 = vst.msk [vmem:[#allocation2] sm:$0xff] %vm440_vm6, %v432_v31 }
 0x19c   :  { %v504_v32 = vpop.f32.mrb[2].mxu0 }
 0x19d   :  { %v505_v33 = vpop.f32.mrb[3].mxu0 }
 0x19e   :  { %v506_v34 = vadd.f32 %v505_v33, %v504_v32 }
 0x1a1   :  { %v436_v35 = vpop.f32.mrb[2].mxu1 }
 0x1a2   :  { %v437_v36 = vadd.f32 %v506_v34, %v436_v35  ;;  %v438_v37 = vpop.f32.mrb[3].mxu1 }
 0x1a4   :  { %442 = vst.msk [vmem:[#allocation2 + $0x8] sm:$0xff] %vm440_vm6, %v437_v36 }
 0x1a5   :  { %620 = shalt.err (!%p617_p4)
}
 0x1a6   :  { %s621_s17 = scalar_lea.hbm %s1184_s2, 256 }
 0x1a7   :  { %p622_p5 = scmp.ne.s32.totalorder %s1184_s2, %s621_s17  ;;  %p625_p6 = scmp.lt.u32.totalorder %s621_s17, %s1184_s2 }
 0x1a9   :  { %p627_p7 = pnand %p625_p6, %p622_p5 }
 0x1ab   :  { %630 = shalt.err (!%p627_p7)
}
 0x1ac   :  { %s645_s22 = smov 128   ;;  %s646_s23 = smov 8  }
 0x1ad   :  { %454 = dma.vmem_to_hbm [thread:$0]  %s449_s13, 256, %s1184_s2, [#allocation3], %s645_s22, %s645_s22, %s646_s23  }
 0x1ae   :  { %631 = dma.done.wait [#allocation3], 256  }
 0x1af   :  { %632 = vsyncadd [#allocation3], 4294967040 }
 0x1b0   :  { %458 = vsyncpa [#allocation3], 1 }

</bundles_post_ra>
